<compile_context>
chip_gen: v5e
topology: v5e:2x2
jax: 0.10.0
libtpu: 0.0.40
codegen_flags: <defaults>
</compile_context>

<pallas_src>
import jax
import jax.numpy as jnp
from jax.experimental import pallas as pl
from jax.experimental.pallas import tpu as pltpu

_H1 = 512   # critic hidden 1
_H2 = 256   # critic hidden 2


def _mi_critic_kernel(f1_ref, f2_ref, f2p_ref, w1a_ref, w1b_ref, b1_ref,
                      w2_ref, b2_ref, w3_ref, b3_ref, out_ref):
    """One batch tile of the 3-layer critic + BCE-with-logits partial sum."""
    f1 = f1_ref[...]                                    # [TB, F] bf16
    f2 = f2_ref[...]                                    # [TB, F] bf16
    f2p = f2p_ref[...]                                  # [TB, F] bf16 (features2[perm])
    tb = f1.shape[0]

    # Layer 1 with split weights (bf16 MXU operands, f32 accumulation). The
    # f1 contribution `a` is shared by the positive and negative halves.
    a = jnp.dot(f1, w1a_ref[...], preferred_element_type=jnp.float32)    # [TB, 512]
    b = jnp.dot(f2, w1b_ref[...], preferred_element_type=jnp.float32)    # [TB, 512]
    bp = jnp.dot(f2p, w1b_ref[...], preferred_element_type=jnp.float32)  # [TB, 512]

    a1 = a + b1_ref[...]                                # b1 add hoisted (once)
    h1 = jnp.maximum(jnp.concatenate([a1 + b, a1 + bp], axis=0), 0.0)    # [2TB, 512]

    # Fused pos/neg layer 2: a single [2TB,512]x[512,256] bf16 MXU matmul.
    # TODO(synk): on v6e/v7x the h1/h2 intermediates could stay bf16 end to
    # end; kept f32 here so the elementwise path is also fast/correct on v5e.
    h2 = jnp.dot(h1.astype(jnp.bfloat16), w2_ref[...],
                 preferred_element_type=jnp.float32) + b2_ref[...]
    h2 = jnp.maximum(h2, 0.0)                           # [2TB, 256]

    # Degenerate N=1 final Linear as VPU multiply + lane reduce (no MXU).
    s = jnp.sum(h2 * w3_ref[...], axis=-1, keepdims=True) + b3_ref[0, 0]  # [2TB, 1]

    # Structural labels: rows [0, TB) are positive pairs (y=1 -> softplus(-s)),
    # rows [TB, 2TB) are negative pairs (y=0 -> softplus(s)).
    row = jax.lax.broadcasted_iota(jnp.int32, s.shape, 0)
    z = jnp.where(row < tb, -s, s)
    loss = jnp.maximum(z, 0.0) + jnp.log1p(jnp.exp(-jnp.abs(z)))          # stable softplus
    partial = jnp.sum(loss)

    # Lane-dense [8,128] slab -> full unmasked store; the tile's partial sum
    # sits at (0, 0), remaining entries are zero; wrapper reduces with sum().
    r = jax.lax.broadcasted_iota(jnp.int32, (8, 128), 0)
    c = jax.lax.broadcasted_iota(jnp.int32, (8, 128), 1)
    out_ref[...] = jnp.where((r == 0) & (c == 0), partial, 0.0)[None]


def _pick_batch_tile(batch):
    # Prefer 2*TB a multiple of 256 (v6e/v7x MXU rows), capped at 512 rows so
    # resident weights + double-buffered feature tiles fit v7x's 64 MiB VMEM.
    for tb in (512, 384, 256, 128):
        if batch % tb == 0:
            return tb
    start = min(batch, 512)
    start -= start % 8
    for tb in range(start, 0, -8):
        if batch % tb == 0:
            return tb
    return batch   # tiny / odd batches: single full-array tile


@jax.jit
def mi_estimator_forward(features1, features2, params, perm):
    """features1/features2: [B, F] f32; params from init_critic_params;
    perm: [B] int32 permutation (torch.randperm equivalent, supplied by caller)."""
    batch, fdim = features1.shape
    tb = _pick_batch_tile(batch)
    num_tiles = batch // tb

    # bf16 feature tiles (halves feature DMA; MXU is bf16-native). Negative-pair
    # gather is done wrapper-side so the kernel stays tileable over batch.
    f1 = features1.astype(jnp.bfloat16)
    f2 = features2.astype(jnp.bfloat16)
    f2p = jnp.take(f2, perm, axis=0)

    feat_spec = pl.BlockSpec((tb, fdim), lambda i: (i, 0))
    const = lambda i: (0, 0)   # resident weights: DMA'd once, reused every tile

    weight_bytes = (2 * fdim * _H1 + _H1 * _H2) * 2 + (_H1 + 2 * _H2 + 1) * 4
    cost = pl.CostEstimate(
        flops=2 * batch * fdim * _H1 * 3 + 2 * (2 * batch) * _H1 * _H2,
        transcendentals=2 * (2 * batch),
        bytes_accessed=weight_bytes + 3 * batch * fdim * 2
        + num_tiles * 8 * 128 * 4)

    partials = pl.pallas_call(
        _mi_critic_kernel,
        out_shape=jax.ShapeDtypeStruct((num_tiles, 8, 128), jnp.float32),
        grid=(num_tiles,),
        in_specs=[
            feat_spec, feat_spec, feat_spec,
            pl.BlockSpec((fdim, _H1), const),                   # w1a (bf16)
            pl.BlockSpec((fdim, _H1), const),                   # w1b (bf16)
            pl.BlockSpec((1, _H1), const),                      # b1  (f32)
            pl.BlockSpec((_H1, _H2), const),                    # w2  (bf16)
            pl.BlockSpec((1, _H2), const),                      # b2  (f32)
            pl.BlockSpec((1, _H2), const),                      # w3  (f32 row)
            pl.BlockSpec(memory_space=pltpu.MemorySpace.SMEM),  # b3  (1,1) scalar
        ],
        out_specs=pl.BlockSpec((1, 8, 128), lambda i: (i, 0, 0)),
        compiler_params=pltpu.CompilerParams(
            dimension_semantics=("parallel",),     # v7x: shard batch tiles over both TCs
            vmem_limit_bytes=32 * 1024 * 1024),    # explicit headroom (v5e default is 16 MiB)
        cost_estimate=cost,
    )(f1, f2, f2p,
      params["w1a"], params["w1b"], params["b1"],
      params["w2"], params["b2"], params["w3"], params["b3"])

    return -(jnp.sum(partials) / (2.0 * batch))


def init_critic_params(key, feature_dim):
    """Init mirroring nn.Linear defaults (uniform +-1/sqrt(fan_in)).

    Layer-1 weight stored split as w1a/w1b ([F,512] each, [in,out] layout, bf16);
    w2 is bf16; layer-3 weight is a [1,256] f32 row; b3 is a (1,1) f32 SMEM scalar."""
    f = feature_dim
    params = {}

    key, k_w1, k_b1 = jax.random.split(key, 3)
    bound1 = 1.0 / ((2 * f) ** 0.5)
    w1 = jax.random.uniform(k_w1, (2 * f, _H1), jnp.float32, -bound1, bound1)
    params["w1a"] = w1[:f].astype(jnp.bfloat16)
    params["w1b"] = w1[f:].astype(jnp.bfloat16)
    params["b1"] = jax.random.uniform(k_b1, (1, _H1), jnp.float32, -bound1, bound1)

    key, k_w2, k_b2 = jax.random.split(key, 3)
    bound2 = 1.0 / (_H1 ** 0.5)
    params["w2"] = jax.random.uniform(
        k_w2, (_H1, _H2), jnp.float32, -bound2, bound2).astype(jnp.bfloat16)
    params["b2"] = jax.random.uniform(k_b2, (1, _H2), jnp.float32, -bound2, bound2)

    key, k_w3, k_b3 = jax.random.split(key, 3)
    bound3 = 1.0 / (_H2 ** 0.5)
    params["w3"] = jax.random.uniform(k_w3, (1, _H2), jnp.float32, -bound3, bound3)
    params["b3"] = jax.random.uniform(k_b3, (1, 1), jnp.float32, -bound3, bound3)
    return params


if __name__ == "__main__":
    feature_dim = 32
    batch = 8

    root = jax.random.PRNGKey(0)
    k_params, k_f1, k_f2, k_perm = jax.random.split(root, 4)

    params = init_critic_params(k_params, feature_dim)
    features1 = jax.random.normal(k_f1, (batch, feature_dim), jnp.float32)
    features2 = jax.random.normal(k_f2, (batch, feature_dim), jnp.float32)
    # torch.randperm equivalent, made deterministic with a fixed key.
    perm = jax.random.permutation(k_perm, batch).astype(jnp.int32)

    result = mi_estimator_forward(features1, features2, params, perm)
    jax.block_until_ready(result)

    # Pure-JAX reference of the original module's forward, evaluated with the
    # same bf16-rounded weights / features / layer-2 input as the kernel.
    f1b = features1.astype(jnp.bfloat16).astype(jnp.float32)
    f2b = features2.astype(jnp.bfloat16).astype(jnp.float32)
    w1_full = jnp.concatenate([params["w1a"], params["w1b"]], axis=0).astype(jnp.float32)
    w2 = params["w2"].astype(jnp.float32)
    pos = jnp.concatenate([f1b, f2b], axis=1)
    neg = jnp.concatenate([f1b, f2b[perm]], axis=1)
    pairs = jnp.concatenate([pos, neg], axis=0)
    h = jnp.maximum(pairs @ w1_full + params["b1"], 0.0)
    h = jnp.maximum(h.astype(jnp.bfloat16).astype(jnp.float32) @ w2 + params["b2"], 0.0)
    s = jnp.sum(h * params["w3"], axis=-1) + params["b3"][0, 0]
    y = jnp.concatenate([jnp.ones(batch), jnp.zeros(batch)])
    ref = -jnp.mean(jnp.maximum(s, 0.0) - s * y + jnp.log1p(jnp.exp(-jnp.abs(s))))

    assert jnp.allclose(result, ref, atol=1e-4, rtol=1e-4), (result, ref)
    print("KERNEL_OK")
</pallas_src>

<mosaic_0001>
module attributes {stable_mosaic.version = 11 : i64} {
  func.func @_mi_critic_kernel(%arg0: i32, %arg1: memref<8x32xbf16, #tpu.memory_space<vmem>>, %arg2: memref<8x32xbf16, #tpu.memory_space<vmem>>, %arg3: memref<8x32xbf16, #tpu.memory_space<vmem>>, %arg4: memref<32x512xbf16, #tpu.memory_space<vmem>>, %arg5: memref<32x512xbf16, #tpu.memory_space<vmem>>, %arg6: memref<1x512xf32, #tpu.memory_space<vmem>>, %arg7: memref<512x256xbf16, #tpu.memory_space<vmem>>, %arg8: memref<1x256xf32, #tpu.memory_space<vmem>>, %arg9: memref<1x256xf32, #tpu.memory_space<vmem>>, %arg10: memref<1x1xf32, #tpu.memory_space<smem>>, %arg11: memref<1x8x128xf32, #tpu.memory_space<vmem>>) attributes {dimension_semantics = [#tpu.dimension_semantics<parallel>], iteration_bounds = array<i64: 1>, scalar_prefetch = 0 : i64, scratch_operands = 0 : i64, tpu.core_type = #tpu.core_type<tc>, window_params = [{transform_indices = @transform_0, window_bounds = array<i64: 8, 32>}, {transform_indices = @transform_1, window_bounds = array<i64: 8, 32>}, {transform_indices = @transform_2, window_bounds = array<i64: 8, 32>}, {pipeline_mode = #tpu.pipeline_mode<synchronous>, transform_indices = @transform_3, window_bounds = array<i64: 32, 512>}, {pipeline_mode = #tpu.pipeline_mode<synchronous>, transform_indices = @transform_4, window_bounds = array<i64: 32, 512>}, {pipeline_mode = #tpu.pipeline_mode<synchronous>, transform_indices = @transform_5, window_bounds = array<i64: 1, 512>}, {pipeline_mode = #tpu.pipeline_mode<synchronous>, transform_indices = @transform_6, window_bounds = array<i64: 512, 256>}, {pipeline_mode = #tpu.pipeline_mode<synchronous>, transform_indices = @transform_7, window_bounds = array<i64: 1, 256>}, {pipeline_mode = #tpu.pipeline_mode<synchronous>, transform_indices = @transform_8, window_bounds = array<i64: 1, 256>}, {transform_indices = @transform_9, window_bounds = array<i64: 1, 1>}, {transform_indices = @transform_10, window_bounds = array<i64: 1, 8, 128>}]} {
    %c0 = arith.constant 0 : index
    %c0_0 = arith.constant 0 : index
    %0 = vector.load %arg1[%c0, %c0_0] : memref<8x32xbf16, #tpu.memory_space<vmem>>, vector<8x32xbf16>
    %c0_1 = arith.constant 0 : index
    %c0_2 = arith.constant 0 : index
    %1 = vector.load %arg2[%c0_1, %c0_2] : memref<8x32xbf16, #tpu.memory_space<vmem>>, vector<8x32xbf16>
    %c0_3 = arith.constant 0 : index
    %c0_4 = arith.constant 0 : index
    %2 = vector.load %arg3[%c0_3, %c0_4] : memref<8x32xbf16, #tpu.memory_space<vmem>>, vector<8x32xbf16>
    %c0_5 = arith.constant 0 : index
    %c0_6 = arith.constant 0 : index
    %3 = vector.load %arg4[%c0_5, %c0_6] : memref<32x512xbf16, #tpu.memory_space<vmem>>, vector<32x512xbf16>
    %cst = arith.constant dense<0.000000e+00> : vector<8x512xf32>
    %4 = tpu.matmul %0, %3, %cst {dimension_numbers = #tpu.dot_dimension_numbers<[1], [0], [0], [1], [0, 0, 1, 1], [], []>} : vector<8x32xbf16>, vector<32x512xbf16>, vector<8x512xf32> -> vector<8x512xf32>
    %c0_7 = arith.constant 0 : index
    %c0_8 = arith.constant 0 : index
    %5 = vector.load %arg5[%c0_7, %c0_8] : memref<32x512xbf16, #tpu.memory_space<vmem>>, vector<32x512xbf16>
    %cst_9 = arith.constant dense<0.000000e+00> : vector<8x512xf32>
    %6 = tpu.matmul %1, %5, %cst_9 {dimension_numbers = #tpu.dot_dimension_numbers<[1], [0], [0], [1], [0, 0, 1, 1], [], []>} : vector<8x32xbf16>, vector<32x512xbf16>, vector<8x512xf32> -> vector<8x512xf32>
    %c0_10 = arith.constant 0 : index
    %c0_11 = arith.constant 0 : index
    %7 = vector.load %arg5[%c0_10, %c0_11] : memref<32x512xbf16, #tpu.memory_space<vmem>>, vector<32x512xbf16>
    %cst_12 = arith.constant dense<0.000000e+00> : vector<8x512xf32>
    %8 = tpu.matmul %2, %7, %cst_12 {dimension_numbers = #tpu.dot_dimension_numbers<[1], [0], [0], [1], [0, 0, 1, 1], [], []>} : vector<8x32xbf16>, vector<32x512xbf16>, vector<8x512xf32> -> vector<8x512xf32>
    %c0_13 = arith.constant 0 : index
    %c0_14 = arith.constant 0 : index
    %9 = vector.load %arg6[%c0_13, %c0_14] : memref<1x512xf32, #tpu.memory_space<vmem>>, vector<1x512xf32>
    %10 = vector.broadcast %9 : vector<1x512xf32> to vector<8x512xf32>
    %11 = arith.addf %4, %10 : vector<8x512xf32>
    %12 = arith.addf %11, %6 : vector<8x512xf32>
    %13 = arith.addf %11, %8 : vector<8x512xf32>
    %14 = tpu.concatenate %12, %13 in 0 : vector<8x512xf32>, vector<8x512xf32> -> vector<16x512xf32>
    %cst_15 = arith.constant 0.000000e+00 : f32
    %15 = vector.broadcast %cst_15 : f32 to vector<16x512xf32>
    %16 = arith.maximumf %14, %15 : vector<16x512xf32>
    %17 = arith.truncf %16 : vector<16x512xf32> to vector<16x512xbf16>
    %c0_16 = arith.constant 0 : index
    %c0_17 = arith.constant 0 : index
    %18 = vector.load %arg7[%c0_16, %c0_17] : memref<512x256xbf16, #tpu.memory_space<vmem>>, vector<512x256xbf16>
    %cst_18 = arith.constant dense<0.000000e+00> : vector<16x256xf32>
    %19 = tpu.matmul %17, %18, %cst_18 {dimension_numbers = #tpu.dot_dimension_numbers<[1], [0], [0], [1], [0, 0, 1, 1], [], []>} : vector<16x512xbf16>, vector<512x256xbf16>, vector<16x256xf32> -> vector<16x256xf32>
    %c0_19 = arith.constant 0 : index
    %c0_20 = arith.constant 0 : index
    %20 = vector.load %arg8[%c0_19, %c0_20] : memref<1x256xf32, #tpu.memory_space<vmem>>, vector<1x256xf32>
    %21 = vector.broadcast %20 : vector<1x256xf32> to vector<16x256xf32>
    %22 = arith.addf %19, %21 : vector<16x256xf32>
    %cst_21 = arith.constant 0.000000e+00 : f32
    %23 = vector.broadcast %cst_21 : f32 to vector<16x256xf32>
    %24 = arith.maximumf %22, %23 : vector<16x256xf32>
    %c0_22 = arith.constant 0 : index
    %c0_23 = arith.constant 0 : index
    %25 = vector.load %arg9[%c0_22, %c0_23] : memref<1x256xf32, #tpu.memory_space<vmem>>, vector<1x256xf32>
    %26 = vector.broadcast %25 : vector<1x256xf32> to vector<16x256xf32>
    %27 = arith.mulf %24, %26 : vector<16x256xf32>
    %cst_24 = arith.constant dense<0.000000e+00> : vector<16xf32>
    %28 = vector.multi_reduction <add>, %27, %cst_24 [1] : vector<16x256xf32> to vector<16xf32>
    %29 = vector.shape_cast %28 : vector<16xf32> to vector<16x1xf32>
    %c0_25 = arith.constant 0 : index
    %c0_26 = arith.constant 0 : index
    %30 = memref.load %arg10[%c0_25, %c0_26] : memref<1x1xf32, #tpu.memory_space<smem>>
    %31 = vector.broadcast %30 : f32 to vector<16x1xf32>
    %32 = arith.addf %29, %31 : vector<16x1xf32>
    %33 = tpu.iota {dimensions = array<i32: 0>} : vector<16x1xi32>
    %c8_i32 = arith.constant 8 : i32
    %34 = vector.broadcast %c8_i32 : i32 to vector<16x1xi32>
    %35 = arith.cmpi slt, %33, %34 : vector<16x1xi32>
    %cst_27 = arith.constant 0.000000e+00 : f32
    %36 = vector.broadcast %cst_27 : f32 to vector<16x1xf32>
    %37 = arith.subf %36, %32 : vector<16x1xf32>
    %38 = arith.select %35, %37, %32 : vector<16x1xi1>, vector<16x1xf32>
    %cst_28 = arith.constant 0.000000e+00 : f32
    %39 = vector.broadcast %cst_28 : f32 to vector<16x1xf32>
    %40 = arith.maximumf %38, %39 : vector<16x1xf32>
    %41 = math.absf %38 : vector<16x1xf32>
    %cst_29 = arith.constant 0.000000e+00 : f32
    %42 = vector.broadcast %cst_29 : f32 to vector<16x1xf32>
    %43 = arith.subf %42, %41 : vector<16x1xf32>
    %44 = math.exp %43 : vector<16x1xf32>
    %45 = math.log1p %44 : vector<16x1xf32>
    %46 = arith.addf %40, %45 : vector<16x1xf32>
    %47 = vector.shape_cast %46 : vector<16x1xf32> to vector<1x16x1xf32>
    %cst_30 = arith.constant dense<0.000000e+00> : vector<1xf32>
    %48 = vector.multi_reduction <add>, %47, %cst_30 [1, 2] : vector<1x16x1xf32> to vector<1xf32>
    %49 = vector.shape_cast %48 : vector<1xf32> to vector<1x1x1xf32>
    %50 = vector.extract %49[0, 0, 0] : f32 from vector<1x1x1xf32>
    %51 = tpu.iota {dimensions = array<i32: 0>} : vector<8x128xi32>
    %52 = tpu.iota {dimensions = array<i32: 1>} : vector<8x128xi32>
    %c0_i32 = arith.constant 0 : i32
    %53 = vector.broadcast %c0_i32 : i32 to vector<8x128xi32>
    %54 = arith.cmpi eq, %51, %53 : vector<8x128xi32>
    %c0_i32_31 = arith.constant 0 : i32
    %55 = vector.broadcast %c0_i32_31 : i32 to vector<8x128xi32>
    %56 = arith.cmpi eq, %52, %55 : vector<8x128xi32>
    %57 = arith.andi %54, %56 : vector<8x128xi1>
    %cst_32 = arith.constant 0.000000e+00 : f32
    %58 = vector.broadcast %50 : f32 to vector<8x128xf32>
    %59 = vector.broadcast %cst_32 : f32 to vector<8x128xf32>
    %60 = arith.select %57, %58, %59 : vector<8x128xi1>, vector<8x128xf32>
    %61 = vector.shape_cast %60 : vector<8x128xf32> to vector<1x8x128xf32>
    %c0_33 = arith.constant 0 : index
    %c0_34 = arith.constant 0 : index
    %c0_35 = arith.constant 0 : index
    %62 = vector.load %arg11[%c0_33, %c0_34, %c0_35] : memref<1x8x128xf32, #tpu.memory_space<vmem>>, vector<1x8x128xf32>
    tpu.vector_store %arg11[%c0_33, %c0_34, %c0_35], %61 {strides = array<i32>} : memref<1x8x128xf32, #tpu.memory_space<vmem>>, vector<1x8x128xf32>,
    return
  }
  func.func @transform_0(%arg0: i32) -> (i32, i32) {
    %c0_i32 = arith.constant 0 : i32
    %c0_i32_0 = arith.constant 0 : i32
    return %arg0, %c0_i32 : i32, i32
  }
  func.func @transform_1(%arg0: i32) -> (i32, i32) {
    %c0_i32 = arith.constant 0 : i32
    %c0_i32_0 = arith.constant 0 : i32
    return %arg0, %c0_i32 : i32, i32
  }
  func.func @transform_2(%arg0: i32) -> (i32, i32) {
    %c0_i32 = arith.constant 0 : i32
    %c0_i32_0 = arith.constant 0 : i32
    return %arg0, %c0_i32 : i32, i32
  }
  func.func @transform_3(%arg0: i32) -> (i32, i32) {
    %c0_i32 = arith.constant 0 : i32
    %c0_i32_0 = arith.constant 0 : i32
    %c0_i32_1 = arith.constant 0 : i32
    return %c0_i32, %c0_i32_0 : i32, i32
  }
  func.func @transform_4(%arg0: i32) -> (i32, i32) {
    %c0_i32 = arith.constant 0 : i32
    %c0_i32_0 = arith.constant 0 : i32
    %c0_i32_1 = arith.constant 0 : i32
    return %c0_i32, %c0_i32_0 : i32, i32
  }
  func.func @transform_5(%arg0: i32) -> (i32, i32) {
    %c0_i32 = arith.constant 0 : i32
    %c0_i32_0 = arith.constant 0 : i32
    %c0_i32_1 = arith.constant 0 : i32
    return %c0_i32, %c0_i32_0 : i32, i32
  }
  func.func @transform_6(%arg0: i32) -> (i32, i32) {
    %c0_i32 = arith.constant 0 : i32
    %c0_i32_0 = arith.constant 0 : i32
    %c0_i32_1 = arith.constant 0 : i32
    return %c0_i32, %c0_i32_0 : i32, i32
  }
  func.func @transform_7(%arg0: i32) -> (i32, i32) {
    %c0_i32 = arith.constant 0 : i32
    %c0_i32_0 = arith.constant 0 : i32
    %c0_i32_1 = arith.constant 0 : i32
    return %c0_i32, %c0_i32_0 : i32, i32
  }
  func.func @transform_8(%arg0: i32) -> (i32, i32) {
    %c0_i32 = arith.constant 0 : i32
    %c0_i32_0 = arith.constant 0 : i32
    %c0_i32_1 = arith.constant 0 : i32
    return %c0_i32, %c0_i32_0 : i32, i32
  }
  func.func @transform_9(%arg0: i32) -> (i32, i32) {
    %c0_i32 = arith.constant 0 : i32
    %c0_i32_0 = arith.constant 0 : i32
    %c0_i32_1 = arith.constant 0 : i32
    return %c0_i32, %c0_i32_0 : i32, i32
  }
  func.func @transform_10(%arg0: i32) -> (i32, i32, i32) {
    %c0_i32 = arith.constant 0 : i32
    %c0_i32_0 = arith.constant 0 : i32
    %c0_i32_1 = arith.constant 0 : i32
    return %arg0, %c0_i32, %c0_i32_0 : i32, i32, i32
  }
}

</mosaic_0001>

<bundles_post_ra>
// kernel: mi_estimator_forward.1
= control target key start
LH: loop header
LB: loop body
LE: loop exit
PB: predicated region body
PF: predicated region fallthrough
CT: control target
= control target key end

     0   :  { %16 = vsyncpa [#allocation4], 0  ;;  %s1602_s0 = inlined_call_operand.vmem [shape: bf16[8,32], index: 0, kind: input, shape index: {}]   ;;  %s1603_s1 = inlined_call_operand.vmem [shape: bf16[8,32], index: 1, kind: input, shape index: {}]   ;;  %s1604_s2 = inlined_call_operand.vmem [shape: bf16[8,32], index: 2, kind: input, shape index: {}]   ;;  %s1605_s3 = inlined_call_operand.vmem [shape: bf16[32,512], index: 3, kind: input, shape index: {}]   ;;  %s1606_s4 = inlined_call_operand.hbm [shape: bf16[32,512], index: 4, kind: input, shape index: {}]   ;;  %s1607_s5 = inlined_call_operand.vmem [shape: f32[1,512], index: 5, kind: input, shape index: {}]   ;;  %s1608_s6 = inlined_call_operand.hbm [shape: bf16[512,256], index: 6, kind: input, shape index: {}]   ;;  %s1609_s7 = inlined_call_operand.vmem [shape: f32[1,256], index: 7, kind: input, shape index: {}]   ;;  %s1610_s8 = inlined_call_operand.vmem [shape: f32[1,256], index: 8, kind: input, shape index: {}]   ;;  %s1611_s9 = inlined_call_operand.<no memory space> [shape: f32[1,1], index: 9, kind: input, shape index: {}]   ;;  %s1612_s10 = inlined_call_operand.vmem [shape: f32[1,8,128], index: 10, kind: output, shape index: {}]  }
   0x1   :  { %s30_s15 = sshll.u32 %s1606_s4, 4  ;;  %s31_s15 = int_to_ptr.hbm [resolvable:$true] %s30_s15 }
   0x2   :  { %17 = vsyncpa [#allocation6], 0  ;;  %s1436_s16 = smov [#allocation3]   ;;  %s45_s20 = sshll.u32 %s1608_s6, 4  ;;  %s46_s20 = int_to_ptr.hbm [resolvable:$true] %s45_s20 }
   0x3   :  { %s32_s17 = sshll.u32 %s1436_s16, 4  ;;  %s1437_s21 = smov 256   ;;  %s33_s17 = int_to_ptr.vmem [resolvable:$true] %s32_s17 }
   0x4   :  { %s1438_s22 = smov 16   ;;  %s1439_s23 = smov [#allocation5]  }
   0x5   :  { %38 = dma.hbm_to_vmem [thread:$0]  %s31_s15, 1024, %s33_s17, [#allocation4], %s1437_s21, %s1437_s21, %s1438_s22  }
   0x6   :  { %s47_s24 = sshll.u32 %s1439_s23, 4  ;;  %s1440_s25 = smov 128   ;;  %s48_s24 = int_to_ptr.vmem [resolvable:$true] %s47_s24 }
   0x7   :  { %s1441_s26 = smov 8  }
   0x8   :  { %53 = dma.hbm_to_vmem [thread:$0]  %s46_s20, 8192, %s48_s24, [#allocation6], %s1440_s25, %s1440_s25, %s1441_s26  }
   0x9   :  { %1432 = dma.done.wait [#allocation4], 1024  }
   0xa   :  { %1433 = vsyncadd [#allocation4], 4294966272 }
   0xb   :  { %1434 = dma.done.wait [#allocation6], 8192  }
   0xc   :  { %1435 = vsyncadd [#allocation6], 4294959104  ;;  %v974_v0 = vld [vmem:[#allocation3 + $0x20] sm:$0xf]  ;;  %v1302_v1 = vld [vmem:[#allocation3 + $0x2c] sm:$0xf0] }
   0xd   :  { %v1300_v2 = vld [vmem:[#allocation3 + $0x24] sm:$0xf]  ;;  %v975_v3 = vor.u32 %v1302_v1, %v974_v0  ;;  %v976_v4 = vld [vmem:[#allocation3 + $0x30] sm:$0xf0]  ;;  %v982_v5 = vld [vmem:[#allocation3 + $0x28] sm:$0xf] }
   0xe   :  { %v1303_v6 = vld [vmem:[#allocation3 + $0x34] sm:$0xf0]  ;;  %v979_v7 = vor.u32 %v1300_v2, %v976_v4  ;;  %v1301_v9 = vld [vmem:[#allocation3 + $0x2c] sm:$0xf]  ;;  %v984_v10 = vld [vmem:[#allocation3 + $0x38] sm:$0xf0] }
   0xf   :  { %v983_v8 = vor.u32 %v1303_v6, %v982_v5  ;;  %v958_v11 = vld [vmem:[#allocation3] sm:$0xf]  ;;  %138 = vmatpush.bf16.msra.mxu0 %v975_v3  ;;  %v987_v12 = vor.u32 %v1301_v9, %v984_v10  ;;  %v1298_v13 = vld [vmem:[#allocation3 + $0xc] sm:$0xf0]  ;;  %v1296_v14 = vld [vmem:[#allocation3 + $0x4] sm:$0xf] }
  0x10   :  { %v960_v15 = vld [vmem:[#allocation3 + $0x10] sm:$0xf0]  ;;  %151 = vmatpush.bf16.msra.mxu1 %v979_v7  ;;  %v959_v16 = vor.u32 %v1298_v13, %v958_v11  ;;  %v966_v18 = vld [vmem:[#allocation3 + $0x8] sm:$0xf]  ;;  %v1299_v19 = vld [vmem:[#allocation3 + $0x14] sm:$0xf0] }
  0x11   :  { %164 = vmatpush.bf16.msra.mxu2 %v983_v8  ;;  %v963_v17 = vor.u32 %v1296_v14, %v960_v15  ;;  %v1297_v20 = vld [vmem:[#allocation3 + $0xc] sm:$0xf]  ;;  %177 = vmatpush.bf16.msra.mxu3 %v987_v12  ;;  %v967_v21 = vor.u32 %v1299_v19, %v966_v18  ;;  %v968_v22 = vld [vmem:[#allocation3 + $0x18] sm:$0xf0]  ;;  %vm128_vm0 = vcmask 261120   ;;  %vm929_vm3 = vcmask 7168  }
  0x12   :  { %v971_v23 = vor.u32 %v1297_v20, %v968_v22  ;;  %v70_v24 = vld [vmem:[%s1603_s1] sm:$0xf]  ;;  %v1022_v25 = vld [vmem:[%s1605_s3 + $0x28] sm:$0xf]  ;;  %v1295_v26 = vld [vmem:[%s1605_s3 + $0x34] sm:$0xf0] }
  0x13   :  { %139 = vmatpush.bf16.msra.mxu0 %v959_v16  ;;  %v1293_v27 = vld [vmem:[%s1605_s3 + $0x2c] sm:$0xf]  ;;  %v1024_v28 = vld [vmem:[%s1605_s3 + $0x38] sm:$0xf0]  ;;  %v1023_v29 = vor.u32 %v1295_v26, %v1022_v25  ;;  %v1014_v30 = vld [vmem:[%s1605_s3 + $0x20] sm:$0xf] }
  0x14   :  { %152 = vmatpush.bf16.msra.mxu1 %v963_v17  ;;  %v1294_v31 = vld [vmem:[%s1605_s3 + $0x2c] sm:$0xf0]  ;;  %v1006_v32 = vld [vmem:[%s1605_s3 + $0x8] sm:$0xf]  ;;  %v1027_v33 = vor.u32 %v1293_v27, %v1024_v28  ;;  %v1291_v34 = vld [vmem:[%s1605_s3 + $0x14] sm:$0xf0] }
  0x15   :  { %165 = vmatpush.bf16.msra.mxu2 %v967_v21  ;;  %178 = vmatpush.bf16.msra.mxu3 %v971_v23  ;;  %v1292_v35 = vld [vmem:[%s1605_s3 + $0x24] sm:$0xf]  ;;  %v1016_v36 = vld [vmem:[%s1605_s3 + $0x30] sm:$0xf0]  ;;  %v1289_v37 = vld [vmem:[%s1605_s3 + $0xc] sm:$0xf]  ;;  %v1015_v39 = vor.u32 %v1294_v31, %v1014_v30  ;;  %v1007_v40 = vor.u32 %v1291_v34, %v1006_v32 }
  0x16   :  { %988 = vmatmul.msk.bf16.vlgmr.msra.gmra.mxu0 %vm128_vm0, %v70_v24  ;;  %v1008_v38 = vld [vmem:[%s1605_s3 + $0x18] sm:$0xf0]  ;;  %v1019_v41 = vor.u32 %v1292_v35, %v1016_v36  ;;  %v998_v42 = vld [vmem:[%s1605_s3] sm:$0xf]  ;;  %v1290_v43 = vld [vmem:[%s1605_s3 + $0xc] sm:$0xf0] }
  0x17   :  { %989 = vmatmul.msk.bf16.vlgmr.msra.gmra.mxu1 %vm128_vm0, %v70_v24  ;;  %193 = vmatpush.bf16.msrb.mxu0 %v975_v3  ;;  %v1011_v44 = vor.u32 %v1289_v37, %v1008_v38  ;;  %v1288_v45 = vld [vmem:[%s1605_s3 + $0x4] sm:$0xf]  ;;  %v1000_v46 = vld [vmem:[%s1605_s3 + $0x10] sm:$0xf0]  ;;  %v999_v47 = vor.u32 %v1290_v43, %v998_v42  ;;  %v1090_v49 = vld [vmem:[#allocation5 + $0x70] sm:$0xf] }
  0x18   :  { %990 = vmatmul.msk.bf16.vlgmr.msra.gmra.mxu2 %vm128_vm0, %v70_v24  ;;  %991 = vmatmul.msk.bf16.vlgmr.msra.gmra.mxu3 %vm128_vm0, %v70_v24  ;;  %v1003_v48 = vor.u32 %v1288_v45, %v1000_v46  ;;  %v1319_v50 = vld [vmem:[#allocation5 + $0x74] sm:$0xf0]  ;;  %v1154_v51 = vld [vmem:[#allocation5 + $0xf0] sm:$0xf]  ;;  %v71_v53 = vld [vmem:[%s1604_s2] sm:$0xf] }
  0x19   :  { %219 = vmatpush.bf16.msrb.mxu2 %v983_v8  ;;  %232 = vmatpush.bf16.msrb.mxu3 %v987_v12  ;;  %v1335_v52 = vld [vmem:[#allocation5 + $0xf4] sm:$0xf0]  ;;  %v1091_v54 = vor.u32 %v1319_v50, %v1090_v49  ;;  %v69_v56 = vld [vmem:[%s1602_s0] sm:$0xf]  ;;  %v1317_v58 = vld [vmem:[#allocation5 + $0x64] sm:$0xf0] }
  0x1a   :  { %206 = vmatpush.bf16.msrb.mxu1 %v979_v7  ;;  %v1155_v55 = vor.u32 %v1335_v52, %v1154_v51  ;;  %v1082_v57 = vld [vmem:[#allocation5 + $0x60] sm:$0xf]  ;;  %v1333_v61 = vld [vmem:[#allocation5 + $0xe4] sm:$0xf0]  ;;  %v1218_v62 = vld [vmem:[#allocation5 + $0x170] sm:$0xf] }
  0x1b   :  { %194 = vmatpush.bf16.msrb.mxu0 %v959_v16  ;;  %v1146_v59 = vld [vmem:[#allocation5 + $0xe0] sm:$0xf]  ;;  %v1083_v60 = vor.u32 %v1317_v58, %v1082_v57  ;;  %v1351_v63 = vld [vmem:[#allocation5 + $0x174] sm:$0xf0]  ;;  %v1282_v2 = vld [vmem:[#allocation5 + $0x1f0] sm:$0xf] }
  0x1c   :  { %v1147_v0 = vor.u32 %v1333_v61, %v1146_v59  ;;  %v1219_v1 = vor.u32 %v1351_v63, %v1218_v62  ;;  %v1367_v3 = vld [vmem:[#allocation5 + $0x1f4] sm:$0xf0]  ;;  %v1074_v4 = vld [vmem:[#allocation5 + $0x50] sm:$0xf]  ;;  %v1210_v11 = vld [vmem:[#allocation5 + $0x160] sm:$0xf] }
  0x1d   :  { %220 = vmatpush.bf16.msrb.mxu2 %v967_v21  ;;  %233 = vmatpush.bf16.msrb.mxu3 %v971_v23  ;;  %v1283_v5 = vor.u32 %v1367_v3, %v1282_v2  ;;  %v1315_v6 = vld [vmem:[#allocation5 + $0x54] sm:$0xf0]  ;;  %v1138_v7 = vld [vmem:[#allocation5 + $0xd0] sm:$0xf]  ;;  %v1349_v12 = vld [vmem:[#allocation5 + $0x164] sm:$0xf0] }
  0x1e   :  { %207 = vmatpush.bf16.msrb.mxu1 %v963_v17  ;;  %v1331_v8 = vld [vmem:[#allocation5 + $0xd4] sm:$0xf0]  ;;  %v1075_v9 = vor.u32 %v1315_v6, %v1074_v4  ;;  %v1274_v13 = vld [vmem:[#allocation5 + $0x1e0] sm:$0xf]  ;;  %v1211_v14 = vor.u32 %v1349_v12, %v1210_v11  ;;  %v1365_v15 = vld [vmem:[#allocation5 + $0x1e4] sm:$0xf0] }
  0x1f   :  { %298 = vmatpush.bf16.msra.mxu0 %v1015_v39  ;;  %v1139_v10 = vor.u32 %v1331_v8, %v1138_v7  ;;  %v1275_v16 = vor.u32 %v1365_v15, %v1274_v13  ;;  %v1066_v17 = vld [vmem:[#allocation5 + $0x40] sm:$0xf]  ;;  %v1313_v18 = vld [vmem:[#allocation5 + $0x44] sm:$0xf0]  ;;  %v1202_v22 = vld [vmem:[#allocation5 + $0x150] sm:$0xf] }
  0x20   :  { %v1130_v19 = vld [vmem:[#allocation5 + $0xc0] sm:$0xf]  ;;  %v1067_v20 = vor.u32 %v1313_v18, %v1066_v17  ;;  %v1329_v21 = vld [vmem:[#allocation5 + $0xc4] sm:$0xf0]  ;;  %v1347_v23 = vld [vmem:[#allocation5 + $0x154] sm:$0xf0] }
  0x21   :  { %324 = vmatpush.bf16.msra.mxu2 %v1023_v29  ;;  %337 = vmatpush.bf16.msra.mxu3 %v1027_v33  ;;  %v1131_v24 = vor.u32 %v1329_v21, %v1130_v19  ;;  %v1203_v25 = vor.u32 %v1347_v23, %v1202_v22  ;;  %v1266_v26 = vld [vmem:[#allocation5 + $0x1d0] sm:$0xf]  ;;  %v1363_v27 = vld [vmem:[#allocation5 + $0x1d4] sm:$0xf0]  ;;  %v1194_v35 = vld [vmem:[#allocation5 + $0x140] sm:$0xf] }
  0x22   :  { %311 = vmatpush.bf16.msra.mxu1 %v1019_v41  ;;  %v1058_v28 = vld [vmem:[#allocation5 + $0x30] sm:$0xf]  ;;  %v1267_v29 = vor.u32 %v1363_v27, %v1266_v26  ;;  %v1311_v30 = vld [vmem:[#allocation5 + $0x34] sm:$0xf0]  ;;  %v1345_v36 = vld [vmem:[#allocation5 + $0x144] sm:$0xf0] }
  0x23   :  { %299 = vmatpush.bf16.msra.mxu0 %v999_v47  ;;  %v1122_v31 = vld [vmem:[#allocation5 + $0xb0] sm:$0xf]  ;;  %v1327_v32 = vld [vmem:[#allocation5 + $0xb4] sm:$0xf0]  ;;  %v1059_v33 = vor.u32 %v1311_v30, %v1058_v28  ;;  %v1258_v37 = vld [vmem:[#allocation5 + $0x1c0] sm:$0xf]  ;;  %v1195_v38 = vor.u32 %v1345_v36, %v1194_v35 }
  0x24   :  { %v1123_v34 = vor.u32 %v1327_v32, %v1122_v31  ;;  %v1361_v39 = vld [vmem:[#allocation5 + $0x1c4] sm:$0xf0]  ;;  %v1050_v41 = vld [vmem:[#allocation5 + $0x20] sm:$0xf]  ;;  %v1186_v46 = vld [vmem:[#allocation5 + $0x130] sm:$0xf] }
  0x25   :  { %325 = vmatpush.bf16.msra.mxu2 %v1007_v40  ;;  %338 = vmatpush.bf16.msra.mxu3 %v1011_v44  ;;  %v1259_v40 = vor.u32 %v1361_v39, %v1258_v37  ;;  %v1309_v42 = vld [vmem:[#allocation5 + $0x24] sm:$0xf0]  ;;  %v1114_v43 = vld [vmem:[#allocation5 + $0xa0] sm:$0xf]  ;;  %v1343_v47 = vld [vmem:[#allocation5 + $0x134] sm:$0xf0] }
  0x26   :  { %312 = vmatpush.bf16.msra.mxu1 %v1003_v48  ;;  %992 = vmatmul.msk.bf16.vlgmr.msrb.gmra.mxu0 %vm128_vm0, %v71_v53  ;;  %v1051_v44 = vor.u32 %v1309_v42, %v1050_v41  ;;  %v1325_v45 = vld [vmem:[#allocation5 + $0xa4] sm:$0xf0]  ;;  %v1187_v49 = vor.u32 %v1343_v47, %v1186_v46  ;;  %v1250_v50 = vld [vmem:[#allocation5 + $0x1b0] sm:$0xf]  ;;  %v1359_v51 = vld [vmem:[#allocation5 + $0x1b4] sm:$0xf0] }
  0x27   :  { %993 = vmatmul.msk.bf16.vlgmr.msrb.gmra.mxu1 %vm128_vm0, %v71_v53  ;;  %754 = vmatpush.bf16.msrb.mxu0 %v1091_v54  ;;  %v1115_v48 = vor.u32 %v1325_v45, %v1114_v43  ;;  %v1042_v52 = vld [vmem:[#allocation5 + $0x10] sm:$0xf]  ;;  %v1307_v54 = vld [vmem:[#allocation5 + $0x14] sm:$0xf0]  ;;  %v1178_v59 = vld [vmem:[#allocation5 + $0x120] sm:$0xf] }
  0x28   :  { %994 = vmatmul.msk.bf16.vlgmr.msrb.gmra.mxu2 %vm128_vm0, %v71_v53  ;;  %995 = vmatmul.msk.bf16.vlgmr.msrb.gmra.mxu3 %vm128_vm0, %v71_v53  ;;  %v1251_v53 = vor.u32 %v1359_v51, %v1250_v50  ;;  %v1043_v57 = vor.u32 %v1307_v54, %v1042_v52  ;;  %v1242_v61 = vld [vmem:[#allocation5 + $0x1a0] sm:$0xf]  ;;  %v1357_v63 = vld [vmem:[#allocation5 + $0x1a4] sm:$0xf0]  ;;  %v1318_v6 = vld [vmem:[#allocation5 + $0x74] sm:$0xf] }
  0x29   :  { %782 = vmatpush.bf16.msrb.mxu2 %v1219_v1  ;;  %796 = vmatpush.bf16.msrb.mxu3 %v1283_v5  ;;  %v1034_v1 = vld [vmem:[#allocation5] sm:$0xf]  ;;  %v1305_v2 = vld [vmem:[#allocation5 + $0x4] sm:$0xf0]  ;;  %v1092_v7 = vld [vmem:[#allocation5 + $0x78] sm:$0xf0] }
  0x2a   :  { %768 = vmatpush.bf16.msrb.mxu1 %v1155_v55  ;;  %v1106_v55 = vld [vmem:[#allocation5 + $0x90] sm:$0xf]  ;;  %v1098_v3 = vld [vmem:[#allocation5 + $0x80] sm:$0xf]  ;;  %v1035_v4 = vor.u32 %v1305_v2, %v1034_v1  ;;  %v1321_v5 = vld [vmem:[#allocation5 + $0x84] sm:$0xf0] }
  0x2b   :  { %755 = vmatpush.bf16.msrb.mxu0 %v1083_v60  ;;  %v1341_v60 = vld [vmem:[#allocation5 + $0x124] sm:$0xf0]  ;;  %v1099_v8 = vor.u32 %v1321_v5, %v1098_v3  ;;  %v1156_v11 = vld [vmem:[#allocation5 + $0xf8] sm:$0xf0]  ;;  %v1170_v12 = vld [vmem:[#allocation5 + $0x110] sm:$0xf] }
  0x2c   :  { %v1179_v62 = vor.u32 %v1341_v60, %v1178_v59  ;;  %v1234_v15 = vld [vmem:[#allocation5 + $0x190] sm:$0xf]  ;;  %v1316_v19 = vld [vmem:[#allocation5 + $0x64] sm:$0xf]  ;;  %v1148_v23 = vld [vmem:[#allocation5 + $0xe8] sm:$0xf0] }
  0x2d   :  { %783 = vmatpush.bf16.msrb.mxu2 %v1211_v14  ;;  %797 = vmatpush.bf16.msrb.mxu3 %v1275_v16  ;;  %v1339_v14 = vld [vmem:[#allocation5 + $0x114] sm:$0xf0]  ;;  %v1332_v21 = vld [vmem:[#allocation5 + $0xe4] sm:$0xf]  ;;  %v1226_v28 = vld [vmem:[#allocation5 + $0x180] sm:$0xf] }
  0x2e   :  { %769 = vmatpush.bf16.msrb.mxu1 %v1147_v0  ;;  %v1243_v0 = vor.u32 %v1357_v63, %v1242_v61  ;;  %v1355_v16 = vld [vmem:[#allocation5 + $0x194] sm:$0xf0]  ;;  %v1171_v17 = vor.u32 %v1339_v14, %v1170_v12  ;;  %v1151_v26 = vor.u32 %v1332_v21, %v1148_v23  ;;  %v1350_v30 = vld [vmem:[#allocation5 + $0x174] sm:$0xf]  ;;  %v1284_v37 = vld [vmem:[#allocation5 + $0x1f8] sm:$0xf0] }
  0x2f   :  { %756 = vmatpush.bf16.msrb.mxu0 %v1075_v9  ;;  %v1095_v9 = vor.u32 %v1318_v6, %v1092_v7  ;;  %v1235_v18 = vor.u32 %v1355_v16, %v1234_v15  ;;  %v1330_v41 = vld [vmem:[#allocation5 + $0xd4] sm:$0xf]  ;;  %v1140_v42 = vld [vmem:[#allocation5 + $0xd8] sm:$0xf0]  ;;  %v1348_v45 = vld [vmem:[#allocation5 + $0x164] sm:$0xf] }
  0x30   :  { %v1212_v46 = vld [vmem:[#allocation5 + $0x168] sm:$0xf0]  ;;  %v1364_v47 = vld [vmem:[#allocation5 + $0x1e4] sm:$0xf]  ;;  %v1204_v59 = vld [vmem:[#allocation5 + $0x158] sm:$0xf0] }
  0x31   :  { %784 = vmatpush.bf16.msrb.mxu2 %v1203_v25  ;;  %798 = vmatpush.bf16.msrb.mxu3 %v1267_v29  ;;  %v1337_v25 = vld [vmem:[#allocation5 + $0x104] sm:$0xf0]  ;;  %v1312_v51 = vld [vmem:[#allocation5 + $0x44] sm:$0xf]  ;;  %v1068_v52 = vld [vmem:[#allocation5 + $0x48] sm:$0xf0] }
  0x32   :  { %770 = vmatpush.bf16.msrb.mxu1 %v1139_v10  ;;  %v1334_v10 = vld [vmem:[#allocation5 + $0xf4] sm:$0xf]  ;;  %v1353_v29 = vld [vmem:[#allocation5 + $0x184] sm:$0xf0]  ;;  %v1071_v54 = vor.u32 %v1312_v51, %v1068_v52  ;;  %v1124_v7 = vld [vmem:[#allocation5 + $0xb8] sm:$0xf0] }
  0x33   :  { %757 = vmatpush.bf16.msrb.mxu0 %v1067_v20  ;;  %v1159_v13 = vor.u32 %v1334_v10, %v1156_v11  ;;  %v1084_v20 = vld [vmem:[#allocation5 + $0x68] sm:$0xf0]  ;;  %v1227_v32 = vor.u32 %v1353_v29, %v1226_v28  ;;  %v1362_v63 = vld [vmem:[#allocation5 + $0x1d4] sm:$0xf]  ;;  %v1360_v11 = vld [vmem:[#allocation5 + $0x1c4] sm:$0xf] }
  0x34   :  { %v1087_v22 = vor.u32 %v1316_v19, %v1084_v20  ;;  %v1310_v3 = vld [vmem:[#allocation5 + $0x34] sm:$0xf]  ;;  %v1196_v10 = vld [vmem:[#allocation5 + $0x148] sm:$0xf0]  ;;  %v1308_v15 = vld [vmem:[#allocation5 + $0x24] sm:$0xf] }
  0x35   :  { %785 = vmatpush.bf16.msrb.mxu2 %v1195_v38  ;;  %799 = vmatpush.bf16.msrb.mxu3 %v1259_v40  ;;  %v1314_v38 = vld [vmem:[#allocation5 + $0x54] sm:$0xf]  ;;  %v1076_v40 = vld [vmem:[#allocation5 + $0x58] sm:$0xf0]  ;;  %v1052_v16 = vld [vmem:[#allocation5 + $0x28] sm:$0xf0] }
  0x36   :  { %1028 = vmatmul.msk.bf16.vlgmr.msra.gmra.mxu0 %vm128_vm0, %v69_v56  ;;  %771 = vmatpush.bf16.msrb.mxu1 %v1131_v24  ;;  %v1162_v24 = vld [vmem:[#allocation5 + $0x100] sm:$0xf]  ;;  %v1079_v43 = vor.u32 %v1314_v38, %v1076_v40  ;;  %v1326_v5 = vld [vmem:[#allocation5 + $0xb4] sm:$0xf]  ;;  %v1116_v19 = vld [vmem:[#allocation5 + $0xa8] sm:$0xf0] }
  0x37   :  { %1029 = vmatmul.msk.bf16.vlgmr.msra.gmra.mxu1 %vm128_vm0, %v69_v56  ;;  %758 = vmatpush.bf16.msrb.mxu0 %v1059_v33  ;;  %v1163_v27 = vor.u32 %v1337_v25, %v1162_v24  ;;  %v1220_v33 = vld [vmem:[#allocation5 + $0x178] sm:$0xf0]  ;;  %v1358_v24 = vld [vmem:[#allocation5 + $0x1b4] sm:$0xf]  ;;  %v1340_v38 = vld [vmem:[#allocation5 + $0x124] sm:$0xf] }
  0x38   :  { %1030 = vmatmul.msk.bf16.vlgmr.msra.gmra.mxu2 %vm128_vm0, %v69_v56  ;;  %1031 = vmatmul.msk.bf16.vlgmr.msra.gmra.mxu3 %vm128_vm0, %v69_v56  ;;  %v1323_v56 = vld [vmem:[#allocation5 + $0x94] sm:$0xf0]  ;;  %v1223_v36 = vor.u32 %v1350_v30, %v1220_v33  ;;  %v1188_v23 = vld [vmem:[#allocation5 + $0x138] sm:$0xf0]  ;;  %v1338_v51 = vld [vmem:[#allocation5 + $0x114] sm:$0xf] }
  0x39   :  { %v1107_v58 = vor.u32 %v1323_v56, %v1106_v55  ;;  %786 = vmatpush.bf16.msrb.mxu2 %v1187_v49  ;;  %800 = vmatpush.bf16.msrb.mxu3 %v1251_v53  ;;  %v1276_v49 = vld [vmem:[#allocation5 + $0x1e8] sm:$0xf0]  ;;  %v1328_v53 = vld [vmem:[#allocation5 + $0xc4] sm:$0xf]  ;;  %v1252_v28 = vld [vmem:[#allocation5 + $0x1b8] sm:$0xf0] }
  0x3a   :  { %772 = vmatpush.bf16.msrb.mxu1 %v1123_v34  ;;  %v1366_v34 = vld [vmem:[#allocation5 + $0x1f4] sm:$0xf]  ;;  %v1279_v50 = vor.u32 %v1364_v47, %v1276_v49  ;;  %v1132_v55 = vld [vmem:[#allocation5 + $0xc8] sm:$0xf0]  ;;  %v1255_v30 = vor.u32 %v1358_v24, %v1252_v28  ;;  %v1044_v33 = vld [vmem:[#allocation5 + $0x18] sm:$0xf0] }
  0x3b   :  { %759 = vmatpush.bf16.msrb.mxu0 %v1051_v44  ;;  %v1287_v39 = vor.u32 %v1366_v34, %v1284_v37  ;;  %v1143_v44 = vor.u32 %v1330_v41, %v1140_v42  ;;  %v1322_v34 = vld [vmem:[#allocation5 + $0x94] sm:$0xf]  ;;  %v1108_v37 = vld [vmem:[#allocation5 + $0x98] sm:$0xf0]  ;;  %v1356_v42 = vld [vmem:[#allocation5 + $0x1a4] sm:$0xf] }
  0x3c   :  { %v1111_v40 = vor.u32 %v1322_v34, %v1108_v37  ;;  %v1320_v47 = vld [vmem:[#allocation5 + $0x84] sm:$0xf]  ;;  %v1172_v52 = vld [vmem:[#allocation5 + $0x118] sm:$0xf0] }
  0x3d   :  { %787 = vmatpush.bf16.msrb.mxu2 %v1179_v62  ;;  %801 = vmatpush.bf16.msrb.mxu3 %v1243_v0  ;;  %v1268_v0 = vld [vmem:[#allocation5 + $0x1d8] sm:$0xf0] }
  0x3e   :  { %773 = vmatpush.bf16.msrb.mxu1 %v1115_v48  ;;  %v1215_v48 = vor.u32 %v1348_v45, %v1212_v46  ;;  %v1271_v2 = vor.u32 %v1362_v63, %v1268_v0  ;;  %v1036_v46 = vld [vmem:[#allocation5 + $0x8] sm:$0xf0]  ;;  %v239_v63 = vld [vmem:[%s1607_s5] sm:$0xf]  ;;  %v1336_v0 = vld [vmem:[#allocation5 + $0x104] sm:$0xf] }
  0x3f   :  { %760 = vmatpush.bf16.msrb.mxu0 %v1043_v57  ;;  %v1135_v57 = vor.u32 %v1328_v53, %v1132_v55  ;;  %v1354_v53 = vld [vmem:[#allocation5 + $0x194] sm:$0xf] }
  0x41   :  { %788 = vmatpush.bf16.msrb.mxu2 %v1171_v17  ;;  %802 = vmatpush.bf16.msrb.mxu3 %v1235_v18  ;;  %v1324_v17 = vld [vmem:[#allocation5 + $0xa4] sm:$0xf]  ;;  %v1055_v18 = vor.u32 %v1308_v15, %v1052_v16 }
  0x42   :  { %774 = vmatpush.bf16.msrb.mxu1 %v1107_v58  ;;  %v1346_v58 = vld [vmem:[#allocation5 + $0x154] sm:$0xf]  ;;  %v1119_v21 = vor.u32 %v1324_v17, %v1116_v19 }
  0x43   :  { %761 = vmatpush.bf16.msrb.mxu0 %v1035_v4  ;;  %v1207_v62 = vor.u32 %v1346_v58, %v1204_v59  ;;  %v1060_v4 = vld [vmem:[#allocation5 + $0x38] sm:$0xf0] }
  0x44   :  { %v1063_v6 = vor.u32 %v1310_v3, %v1060_v4  ;;  %v1228_v4 = vld [vmem:[#allocation5 + $0x188] sm:$0xf0] }
  0x45   :  { %789 = vmatpush.bf16.msrb.mxu2 %v1163_v27  ;;  %803 = vmatpush.bf16.msrb.mxu3 %v1227_v32  ;;  %v1306_v32 = vld [vmem:[#allocation5 + $0x14] sm:$0xf] }
  0x46   :  { %775 = vmatpush.bf16.msrb.mxu1 %v1099_v8  ;;  %v1127_v8 = vor.u32 %v1326_v5, %v1124_v7  ;;  %v242_v7 = vperm.slane %v239_v63, 1 }
  0x47   :  { %810 = vmatpush.bf16.msra.mxu0 %v1095_v9  ;;  %v1344_v9 = vld [vmem:[#allocation5 + $0x144] sm:$0xf] }
  0x48   :  { %v1199_v12 = vor.u32 %v1344_v9, %v1196_v10 }
  0x49   :  { %838 = vmatpush.bf16.msra.mxu2 %v1223_v36  ;;  %852 = vmatpush.bf16.msra.mxu3 %v1287_v39  ;;  %v1047_v36 = vor.u32 %v1306_v32, %v1044_v33  ;;  %v1180_v39 = vld [vmem:[#allocation5 + $0x128] sm:$0xf0] }
  0x4a   :  { %824 = vmatpush.bf16.msra.mxu1 %v1159_v13  ;;  %v1260_v13 = vld [vmem:[#allocation5 + $0x1c8] sm:$0xf0]  ;;  %v1183_v41 = vor.u32 %v1340_v38, %v1180_v39 }
  0x4b   :  { %811 = vmatpush.bf16.msra.mxu0 %v1087_v22  ;;  %v1263_v14 = vor.u32 %v1360_v11, %v1260_v13  ;;  %v1342_v22 = vld [vmem:[#allocation5 + $0x134] sm:$0xf] }
  0x4c   :  { %v1191_v27 = vor.u32 %v1342_v22, %v1188_v23 }
  0x4d   :  { %839 = vmatpush.bf16.msra.mxu2 %v1215_v48  ;;  %853 = vmatpush.bf16.msra.mxu3 %v1279_v50  ;;  %v1100_v48 = vld [vmem:[#allocation5 + $0x88] sm:$0xf0] }
  0x4e   :  { %825 = vmatpush.bf16.msra.mxu1 %v1151_v26  ;;  %v1103_v50 = vor.u32 %v1320_v47, %v1100_v48 }
  0x4f   :  { %812 = vmatpush.bf16.msra.mxu0 %v1079_v43  ;;  %v1244_v43 = vld [vmem:[#allocation5 + $0x1a8] sm:$0xf0] }
  0x50   :  { %v1247_v45 = vor.u32 %v1356_v42, %v1244_v43 }
  0x51   :  { %840 = vmatpush.bf16.msra.mxu2 %v1207_v62  ;;  %854 = vmatpush.bf16.msra.mxu3 %v1271_v2  ;;  %v1352_v2 = vld [vmem:[#allocation5 + $0x184] sm:$0xf] }
  0x52   :  { %826 = vmatpush.bf16.msra.mxu1 %v1143_v44  ;;  %v1304_v44 = vld [vmem:[#allocation5 + $0x4] sm:$0xf]  ;;  %v1231_v5 = vor.u32 %v1352_v2, %v1228_v4 }
  0x53   :  { %813 = vmatpush.bf16.msra.mxu0 %v1071_v54  ;;  %v1039_v49 = vor.u32 %v1304_v44, %v1036_v46  ;;  %v1236_v54 = vld [vmem:[#allocation5 + $0x198] sm:$0xf0] }
  0x55   :  { %841 = vmatpush.bf16.msra.mxu2 %v1199_v12  ;;  %855 = vmatpush.bf16.msra.mxu3 %v1263_v14 }
  0x56   :  { %827 = vmatpush.bf16.msra.mxu1 %v1135_v57  ;;  %v1175_v57 = vor.u32 %v1338_v51, %v1172_v52 }
  0x57   :  { %814 = vmatpush.bf16.msra.mxu0 %v1063_v6  ;;  %v241_v6 = vperm.slane %v239_v63, 0 }
  0x59   :  { %842 = vmatpush.bf16.msra.mxu2 %v1191_v27  ;;  %856 = vmatpush.bf16.msra.mxu3 %v1255_v30 }
  0x5a   :  { %828 = vmatpush.bf16.msra.mxu1 %v1127_v8 }
  0x5b   :  { %815 = vmatpush.bf16.msra.mxu0 %v1055_v18  ;;  %v243_v18 = vperm.slane %v239_v63, 2 }
  0x5d   :  { %843 = vmatpush.bf16.msra.mxu2 %v1183_v41  ;;  %857 = vmatpush.bf16.msra.mxu3 %v1247_v45 }
  0x5e   :  { %829 = vmatpush.bf16.msra.mxu1 %v1119_v21  ;;  %v244_v21 = vperm.slane %v239_v63, 3 }
  0x5f   :  { %816 = vmatpush.bf16.msra.mxu0 %v1047_v36 }
  0x61   :  { %844 = vmatpush.bf16.msra.mxu2 %v1175_v57 }
  0x62   :  { %830 = vmatpush.bf16.msra.mxu1 %v1111_v40 }
  0x63   :  { %817 = vmatpush.bf16.msra.mxu0 %v1039_v49 }
  0x66   :  { %831 = vmatpush.bf16.msra.mxu1 %v1103_v50 }
  0x93   :  { %v1572_v31 = vpop.f32.mrf.mxu0 }
  0x94   :  { %v1574_v35 = vpop.f32.mrf.mxu1 }
  0x9b   :  { %v1576_v56 = vpop.f32.mrf.mxu2  ;;  %v1578_v60 = vpop.f32.mrf.mxu3 }
  0x9c   :  { %v143_v61 = vpop.f32.mrf.mxu0  ;;  %v156_v1 = vpop.f32.mrf.mxu1 }
  0x9d   :  { %v1239_v61 = vor.u32 %v1354_v53, %v1236_v54  ;;  %v1164_v1 = vld [vmem:[#allocation5 + $0x108] sm:$0xf0] }
  0x9e   :  { %v1167_v3 = vor.u32 %v1336_v0, %v1164_v1  ;;  %v870_v0 = vld [vmem:[%s1610_s8] sm:$0x3] }
  0x9f   :  { %858 = vmatpush.bf16.msra.mxu3 %v1239_v61 }
  0xa0   :  { %845 = vmatpush.bf16.msra.mxu2 %v1167_v3 }
  0xa3   :  { %v169_v20 = vpop.f32.mrf.mxu2  ;;  %v182_v25 = vpop.f32.mrf.mxu3  ;;  %859 = vmatpush.bf16.msra.mxu3 %v1231_v5 }
  0xa4   :  { %v1580_v26 = vpop.f32.mrf.mxu0  ;;  %v209_v29 = vpop.f32.mrf.mxu1 }
  0xab   :  { %v222_v55 = vpop.f32.mrf.mxu2  ;;  %v235_v58 = vpop.f32.mrf.mxu3 }
  0xac   :  { %v198_v59 = vpop.f32.mrf.mxu0  ;;  %v211_v62 = vpop.f32.mrf.mxu1 }
  0xb3   :  { %v224_v8 = vpop.f32.mrf.mxu2  ;;  %v237_v9 = vpop.f32.mrf.mxu3 }
  0xb4   :  { %v301_v10 = vpop.f32.mrf.mxu0  ;;  %v314_v12 = vpop.f32.mrf.mxu1 }
  0xb5   :  { %v302_v11 = vadd.f32 %v301_v10, %v241_v6  ;;  %v315_v13 = vadd.f32 %v314_v12, %v242_v7  ;;  %v872_v6 = vperm.slane %v870_v0, 0  ;;  %v873_v7 = vperm.slane %v870_v0, 1 }
  0xb7   :  { %v344_v14 = vadd.f32 %v302_v11, %v1572_v31  ;;  %v348_v15 = vadd.f32 %v302_v11, %v1580_v26  ;;  %v345_v16 = vadd.f32 %v315_v13, %v1574_v35  ;;  %v349_v17 = vadd.f32 %v315_v13, %v209_v29 }
  0xb9   :  { %v352_v19 = vmax.f32 %v344_v14, 0.0  ;;  %v356_v20 = vmax.f32 %v348_v15, 0.0  ;;  %v353_v22 = vmax.f32 %v345_v16, 0.0  ;;  %v357_v23 = vmax.f32 %v349_v17, 0.0 }
  0xbb   :  { %v360_v24 = vpack.c.bf16 %v356_v20, %v352_v19  ;;  %v327_v25 = vpop.f32.mrf.mxu2  ;;  %v361_v27 = vpack.c.bf16 %v357_v23, %v353_v22  ;;  %v340_v30 = vpop.f32.mrf.mxu3 }
  0xbc   :  { %v328_v28 = vadd.f32 %v327_v25, %v243_v18  ;;  %v303_v32 = vpop.f32.mrf.mxu0  ;;  %v341_v33 = vadd.f32 %v340_v30, %v244_v21  ;;  %v316_v31 = vpop.f32.mrf.mxu1  ;;  %v887_v30 = vstv %s1611_s9 }
  0xbd   :  { %762 = vmatmul.bf16.vlgmr.msrb.gmra.mxu0 %v360_v24  ;;  %776 = vmatmul.bf16.vlgmr.msrb.gmra.mxu1 %v361_v27 }
  0xbe   :  { %v346_v26 = vadd.f32 %v328_v28, %v1576_v56  ;;  %v350_v34 = vadd.f32 %v328_v28, %v222_v55  ;;  %v347_v35 = vadd.f32 %v341_v33, %v1578_v60  ;;  %v351_v29 = vadd.f32 %v341_v33, %v235_v58  ;;  %v428_v60 = vld [vmem:[%s1609_s7] sm:$0x3] }
  0xbf   :  { %v430_v47 = vperm.slane %v428_v60, 0  ;;  %v431_v52 = vperm.slane %v428_v60, 1 }
  0xc0   :  { %v354_v36 = vmax.f32 %v346_v26, 0.0  ;;  %v358_v37 = vmax.f32 %v350_v34, 0.0  ;;  %v355_v38 = vmax.f32 %v347_v35, 0.0  ;;  %v359_v39 = vmax.f32 %v351_v29, 0.0 }
  0xc2   :  { %v362_v40 = vpack.c.bf16 %v358_v37, %v354_v36  ;;  %v363_v41 = vpack.c.bf16 %v359_v39, %v355_v38 }
  0xc3   :  { %v329_v42 = vpop.f32.mrf.mxu2  ;;  %v342_v43 = vpop.f32.mrf.mxu3 }
  0xc4   :  { %790 = vmatmul.bf16.vlgmr.msrb.gmra.mxu2 %v362_v40  ;;  %804 = vmatmul.bf16.vlgmr.msrb.gmra.mxu3 %v363_v41 }
  0xcd   :  { %818 = vmatmul.bf16.vlgmr.msra.gmra.mxu0 %v360_v24  ;;  %832 = vmatmul.bf16.vlgmr.msra.gmra.mxu1 %v361_v27 }
  0xd4   :  { %846 = vmatmul.bf16.vlgmr.msra.gmra.mxu2 %v362_v40  ;;  %860 = vmatmul.bf16.vlgmr.msra.gmra.mxu3 %v363_v41 }
 0x13a   :  { %v763_v56 = vpop.f32.mrf.mxu0  ;;  %v777_v44 = vpop.f32.mrf.mxu1 }
 0x13b   :  { %v764_v50 = vadd.f32 %v763_v56, %v430_v47 }
 0x13d   :  { %v778_v54 = vadd.f32 %v777_v44, %v764_v50 }
 0x142   :  { %v765_v45 = vpop.f32.mrf.mxu0  ;;  %v779_v49 = vpop.f32.mrf.mxu1 }
 0x143   :  { %v766_v61 = vadd.f32 %v765_v45, %v430_v47 }
 0x145   :  { %v780_v3 = vadd.f32 %v779_v49, %v766_v61 }
 0x147   :  { %v791_v46 = vpop.f32.mrf.mxu2  ;;  %v805_v48 = vpop.f32.mrf.mxu3 }
 0x148   :  { %v792_v57 = vadd.f32 %v791_v46, %v778_v54 }
 0x14a   :  { %v819_v51 = vpop.f32.mrf.mxu0  ;;  %v833_v59 = vpop.f32.mrf.mxu1  ;;  %v806_v62 = vadd.f32 %v805_v48, %v792_v57 }
 0x14b   :  { %v820_v58 = vadd.f32 %v819_v51, %v431_v52 }
 0x14c   :  { %v866_v8 = vmax.f32 %v806_v62, 0.0 }
 0x14d   :  { %v834_v63 = vadd.f32 %v833_v59, %v820_v58 }
 0x14e   :  { %v876_v16 = vmul.f32 %v872_v6, %v866_v8  ;;  %v890_v8 = vlaneseq }
 0x14f   :  { %v793_v53 = vpop.f32.mrf.mxu2  ;;  %v807_v55 = vpop.f32.mrf.mxu3 }
 0x150   :  { %v794_v9 = vadd.f32 %v793_v53, %v780_v3 }
 0x152   :  { %v821_v1 = vpop.f32.mrf.mxu0  ;;  %v835_v13 = vpop.f32.mrf.mxu1  ;;  %v808_v14 = vadd.f32 %v807_v55, %v794_v9  ;;  %v891_v9 = vshrl.u32 %v890_v8, 7 }
 0x153   :  { %v822_v10 = vadd.f32 %v821_v1, %v431_v52 }
 0x154   :  { %v868_v22 = vmax.f32 %v808_v14, 0.0  ;;  %vm944_vm4 = vcmp.eq.s32.totalorder %v891_v9, 0 }
 0x155   :  { %v836_v15 = vadd.f32 %v835_v13, %v822_v10  ;;  %v943_v10 = vand.u32 127, %v890_v8 }
 0x156   :  { %v878_v25 = vmul.f32 %v872_v6, %v868_v22 }
 0x157   :  { %v847_v2 = vpop.f32.mrf.mxu2  ;;  %v861_v5 = vpop.f32.mrf.mxu3  ;;  %vm945_vm5 = vcmp.eq.s32.totalorder %v943_v10, 0 }
 0x158   :  { %v848_v4 = vadd.f32 %v847_v2, %v834_v63  ;;  %vm946_vm6 = vmand %vm944_vm4, %vm945_vm5 }
 0x15a   :  { %v862_v11 = vadd.f32 %v861_v5, %v848_v4 }
 0x15c   :  { %v867_v12 = vmax.f32 %v862_v11, 0.0 }
 0x15e   :  { %v877_v17 = vmul.f32 %v873_v7, %v867_v12 }
 0x15f   :  { %v849_v18 = vpop.f32.mrf.mxu2  ;;  %v863_v21 = vpop.f32.mrf.mxu3 }
 0x160   :  { %v850_v19 = vadd.f32 %v849_v18, %v836_v15  ;;  %v880_v20 = vadd.f32 %v877_v17, %v876_v16 }
 0x162   :  { %v864_v23 = vadd.f32 %v863_v21, %v850_v19  ;;  %881 = vadd.xlane.f32.xlu0 %v880_v20 }
 0x164   :  { %v869_v24 = vmax.f32 %v864_v23, 0.0 }
 0x166   :  { %v879_v27 = vmul.f32 %v873_v7, %v869_v24 }
 0x168   :  { %v883_v28 = vadd.f32 %v879_v27, %v878_v25 }
 0x16a   :  { %884 = vadd.xlane.f32.xlu0 %v883_v28 }
 0x1d5   :  { %v882_v32 = vpop.xlane.xlu0 %881 }
 0x1d6   :  { %v888_v33 = vadd.f32 %v887_v30, %v882_v32 }
 0x1d8   :  { %v895_v31 = vsub.f32 0.0, %v888_v33 }
 0x1da   :  { %v901_v26 = vand.u32 2147483647, %v895_v31  ;;  %v899_v53 = vmax.f32 %v895_v31, 0.0 }
 0x1dc   :  { %v903_v34 = vsub.f32 0.0, %v901_v26 }
 0x1dd   :  { %v885_v35 = vpop.xlane.xlu0 %884 }
 0x1de   :  { %v905_v29 = vmul.f32 1.442695, %v903_v34  ;;  %v889_v36 = vadd.f32 %v887_v30, %v885_v35 }
 0x1e0   :  { %1376 = vpow2.f32 %v905_v29  ;;  %v902_v37 = vand.u32 2147483647, %v889_v36  ;;  %v900_v57 = vmax.f32 %v889_v36, 0.0 }
 0x1e2   :  { %v904_v38 = vsub.f32 0.0, %v902_v37 }
 0x1e4   :  { %v907_v39 = vmul.f32 1.442695, %v904_v38 }
 0x1e6   :  { %v1377_v40 = vpop.eup %1376  ;;  %1378 = vpow2.f32 %v907_v39 }
 0x1e7   :  { %v909_v41 = vadd.f32 1.0, %v1377_v40  ;;  %v912_v42 = vmul.f32 -0.5, %v1377_v40  ;;  %v915_v46 = vand.u32 2147483647, %v1377_v40 }
 0x1e9   :  { %1380 = vlog2.f32 %v909_v41  ;;  %v913_v44 = vadd.f32 1.0, %v912_v42  ;;  %vm916_vm1 = vcmp.lt.f32.partialorder %v915_v46, 0.0004427343 }
 0x1eb   :  { %v914_v48 = vmul.f32 %v1377_v40, %v913_v44 }
 0x1ec   :  { %v1379_v43 = vpop.eup %1378 }
 0x1ed   :  { %v918_v56 = vadd.f32 1.0, %v1379_v43  ;;  %v921_v45 = vmul.f32 -0.5, %v1379_v43  ;;  %v924_v50 = vand.u32 2147483647, %v1379_v43 }
 0x1ef   :  { %v1381_v60 = vpop.eup %1380  ;;  %1382 = vlog2.f32 %v918_v56  ;;  %v922_v49 = vadd.f32 1.0, %v921_v45  ;;  %vm925_vm2 = vcmp.lt.f32.partialorder %v924_v50, 0.0004427343 }
 0x1f0   :  { %v911_v47 = vmul.f32 0.6931472, %v1381_v60 }
 0x1f1   :  { %v923_v55 = vmul.f32 %v1379_v43, %v922_v49 }
 0x1f2   :  { %v917_v51 = vsel %vm916_vm1, %v914_v48, %v911_v47 }
 0x1f3   :  { %v927_v58 = vadd.f32 %v917_v51, %v899_v53 }
 0x1f5   :  { %v1383_v52 = vpop.eup %1382  ;;  %v930_v62 = vsel %vm929_vm3, %v927_v58, 0.0 }
 0x1f6   :  { %v920_v54 = vmul.f32 0.6931472, %v1383_v52 }
 0x1f8   :  { %v926_v59 = vsel %vm925_vm2, %v923_v55, %v920_v54 }
 0x1f9   :  { %v928_v61 = vadd.f32 %v926_v59, %v900_v57 }
 0x1fb   :  { %v931_v63 = vsel %vm929_vm3, %v928_v61, 0.0 }
 0x1fc   :  { %v932_v0 = vadd.f32 %v931_v63, %v930_v62 }
 0x1fe   :  { %933 = vadd.xlane.f32.xlu1 %v932_v0 }
 0x271   :  { %v934_v1 = vpop.xlane.xlu1 %933 }
 0x272   :  { %v935_v2 = vrot.slane %v934_v1, 4 }
 0x274   :  { %v936_v3 = vadd.f32 %v935_v2, %v934_v1 }
 0x276   :  { %v937_v4 = vrot.slane %v936_v3, 2 }
 0x278   :  { %v938_v5 = vadd.f32 %v937_v4, %v936_v3 }
 0x27a   :  { %v939_v6 = vrot.slane %v938_v5, 1 }
 0x27c   :  { %v940_v7 = vadd.f32 %v939_v6, %v938_v5 }
 0x27e   :  { %1368 = vpush %v940_v7 }
 0x2af   :  { %s1369_s9 = spop %1368 }
 0x2b0   :  { %v947_v11 = vstv %s1369_s9 }
 0x2b1   :  { %v948_v12 = vsel %vm946_vm6, %v947_v11, 0.0 }
 0x2b2   :  { %949 = vst [vmem:[%s1612_s10] sm:$0xff] %v948_v12 }
 0x2b3   :  { %954 = vsyncpa [#allocation4], 1 }
 0x2b4   :  { %955 = vsyncpa [#allocation6], 1 }

</bundles_post_ra>
